<compile_context>
chip_gen: v7x
topology: tpu7x:2x2x1
jax: 0.10.0
libtpu: 0.0.40
codegen_flags: <defaults>
</compile_context>

<pallas_src>
import math

import numpy as np
import jax
import jax.numpy as jnp
from jax.experimental import pallas as pl
from jax.experimental.pallas import tpu as pltpu


def _round_up(x, m):
    return (x + m - 1) // m * m


def _blk_bytes(shape, itemsize=4):
    """f32 VMEM footprint of a block after (8,128) padding of the last 2 dims."""
    shape = tuple(int(s) for s in shape)
    if len(shape) == 1:
        shape = (1,) + shape
    lead = 1
    for s in shape[:-2]:
        lead *= s
    return lead * _round_up(shape[-2], 8) * _round_up(shape[-1], 128) * itemsize


def _vmem_capacity_bytes():
    """Physical per-core VMEM; conservative fallback if the query is unavailable."""
    try:
        info = pltpu.get_tpu_info()
        for attr in ("vmem_capacity_bytes", "vmem_bytes", "vmem_size_bytes"):
            v = getattr(info, attr, None)
            if v:
                return int(v)
    except Exception:
        pass
    return 64 * 1024 * 1024  # v7x-safe fallback


# ----------------------------------------------------------------------------
# Kernel 1: row-tiled linear  y = x @ W + b   (fused Q|K|V projection, N rows)
# ----------------------------------------------------------------------------
def _linear_kernel(x_ref, w_ref, b_ref, o_ref):
    y = jnp.dot(x_ref[...], w_ref[...], preferred_element_type=jnp.float32)
    o_ref[...] = (y + b_ref[...]).astype(o_ref.dtype)


def linear(x, w, b, *, block_rows=512):
    M, K = x.shape
    _, F = w.shape
    tm = min(block_rows, M)
    return pl.pallas_call(
        _linear_kernel,
        out_shape=jax.ShapeDtypeStruct((M, F), jnp.float32),
        grid=(pl.cdiv(M, tm),),
        in_specs=[
            pl.BlockSpec((tm, K), lambda i: (i, 0)),
            pl.BlockSpec((K, F), lambda i: (0, 0)),
            pl.BlockSpec((1, F), lambda i: (0, 0)),
        ],
        out_specs=pl.BlockSpec((tm, F), lambda i: (i, 0)),
        compiler_params=pltpu.CompilerParams(dimension_semantics=("parallel",)),
    )(x, w, b)


# ----------------------------------------------------------------------------
# Kernel 2: fused edge-projection + per-edge attention + message aggregation.
#   grid = (N/Tdst  [parallel],  N/Tsrc  [arbitrary/reduction])
#   lane packing: G sources per 128-lane row; GHD = G*H*D, GIN = G*in_dim.
# ----------------------------------------------------------------------------
def _fused_edge_attn_kernel(q_ref, k_ref, v_ref, e_ref, we_ref, be_ref,
                            sel_log_ref, sel_bc_ref, sel_grp_ref,
                            hout_ref, eout_ref, wv_acc, z_acc):
    j = pl.program_id(1)

    @pl.when(j == 0)
    def _():
        wv_acc[...] = jnp.zeros_like(wv_acc)
        z_acc[...] = jnp.zeros_like(z_acc)

    tdst, sgrp, gin = e_ref.shape        # sgrp = Tsrc // G source groups
    ghd = q_ref.shape[1]

    # --- fused edge projection on the MXU (block-diag We) -> packed lanes ----
    e2 = e_ref[...].reshape(tdst * sgrp, gin)
    pe = jnp.dot(e2, we_ref[...], preferred_element_type=jnp.float32) + be_ref[...]

    q = q_ref[...]                       # (Tdst, GHD)  scaled by 1/sqrt(D), G-tiled
    k = k_ref[...]                       # (sgrp, GHD)  packed sources
    kq = (q[:, None, :] * k[None, :, :]).reshape(tdst * sgrp, ghd)
    score = kq * pe                      # (Tdst*sgrp, GHD)  == e_out block
    eout_ref[...] = score.reshape(tdst, sgrp, ghd).astype(eout_ref.dtype)

    # per-(source-in-group, head) logits via 0/1 selector matmul (MXU)
    logits = jnp.dot(score, sel_log_ref[...], preferred_element_type=jnp.float32)
    a = jnp.exp(jnp.clip(logits, -5.0, 5.0))            # (Tdst*sgrp, G*H)

    # broadcast a back onto packed HD lanes (MXU) and reduce over sources
    ab = jnp.dot(a, sel_bc_ref[...], preferred_element_type=jnp.float32)
    ab3 = ab.reshape(tdst, sgrp, ghd)
    wv_acc[...] += jnp.sum(ab3 * v_ref[...][None, :, :], axis=1)
    z_acc[...] += jnp.sum(ab3, axis=1)

    @pl.when(j == pl.num_programs(1) - 1)
    def _():
        # reduce over the G lane groups with a tiny selector matmul, then divide
        wv = jnp.dot(wv_acc[...], sel_grp_ref[...], preferred_element_type=jnp.float32)
        z = jnp.dot(z_acc[...], sel_grp_ref[...], preferred_element_type=jnp.float32)
        hout_ref[...] = (wv / (z + 1e-6)).astype(hout_ref.dtype)


def _step_vmem_bytes(tdst, tsrc, g, in_dim, hd, num_heads):
    gin, ghd, gh = g * in_dim, g * hd, g * num_heads
    sgrp = tsrc // g
    pipelined = (_blk_bytes((tdst, ghd))              # Q tile
                 + 2 * _blk_bytes((sgrp, ghd))        # K, V tiles
                 + _blk_bytes((tdst, sgrp, gin))      # raw edge tile
                 + _blk_bytes((tdst, sgrp, ghd))      # e_out tile
                 + _blk_bytes((tdst, hd)))            # h_out tile
    resident = (_blk_bytes((gin, ghd)) + _blk_bytes((1, ghd))
                + _blk_bytes((ghd, gh)) + _blk_bytes((gh, ghd))
                + _blk_bytes((ghd, hd)))
    scratch = 2 * _blk_bytes((tdst, ghd))
    interm = 6 * _blk_bytes((tdst * sgrp, ghd))       # pe/kq/score/a/ab/products
    return 2 * pipelined + 2 * resident + scratch + interm


def _pick_tiles(n, g, in_dim, hd, num_heads, budget):
    dst_cands = [t for t in range(8, n + 1, 8) if n % t == 0]
    if not dst_cands:
        dst_cands = [n]
    multi = [t for t in dst_cands if n // t >= 2]     # prefer >=2 dst grid steps
    if multi:
        dst_cands = multi
    src_cands = [t for t in range(g, n + 1, g)
                 if n % t == 0 and ((t // g) % 8 == 0 or t == n)]
    if not src_cands:
        src_cands = [n]
    best = None
    for td in dst_cands:
        for ts in src_cands:
            if _step_vmem_bytes(td, ts, g, in_dim, hd, num_heads) <= budget:
                key = (td * ts, ts, td)
                if best is None or key > best[0]:
                    best = (key, td, ts)
    if best is None:
        return min(dst_cands), min(src_cands)
    return best[1], best[2]


def _selectors(g, num_heads, out_dim):
    hd = num_heads * out_dim
    ghd, gh = g * hd, g * num_heads
    lane = np.arange(ghd)
    sel_log = (lane[:, None] // out_dim == np.arange(gh)[None, :]).astype(np.float32)
    sel_bc = np.ascontiguousarray(sel_log.T)
    sel_grp = ((lane % hd)[:, None] == np.arange(hd)[None, :]).astype(np.float32)
    return jnp.asarray(sel_log), jnp.asarray(sel_bc), jnp.asarray(sel_grp)


def fused_edge_attention(q_t, k_p, v_p, e3, we_blk, be_blk,
                         sel_log, sel_bc, sel_grp, *,
                         in_dim, hd, num_heads, tdst=None, tsrc=None):
    n, ghd = q_t.shape
    n_g = e3.shape[1]
    g = n // n_g
    gin = g * in_dim
    assert ghd == g * hd and e3.shape == (n, n_g, gin)

    cap = _vmem_capacity_bytes()
    limit_cap = int(cap * 0.75)            # ~48 MiB on v7x, ~96 MiB on v5e/v6e
    budget = int(limit_cap * 0.85)

    if tdst is None or tsrc is None:
        td, ts = _pick_tiles(n, g, in_dim, hd, num_heads, budget)
        tdst = td if tdst is None else tdst
        tsrc = ts if tsrc is None else tsrc

    assert n % tdst == 0 and (tdst % 8 == 0 or tdst == n)
    assert n % tsrc == 0 and tsrc % g == 0 and ((tsrc // g) % 8 == 0 or tsrc == n)
    sgrp = tsrc // g
    gh = g * num_heads

    est = _step_vmem_bytes(tdst, tsrc, g, in_dim, hd, num_heads)
    vmem_limit = int(min(limit_cap, max(2 * est, 32 * 1024 * 1024)))

    return pl.pallas_call(
        _fused_edge_attn_kernel,
        out_shape=(
            jax.ShapeDtypeStruct((n, hd), jnp.float32),         # h_out
            jax.ShapeDtypeStruct((n, n_g, ghd), jnp.float32),   # e_out (packed lanes)
        ),
        grid=(n // tdst, n // tsrc),
        in_specs=[
            pl.BlockSpec((tdst, ghd), lambda i, j: (i, 0)),          # Q (dst tile)
            pl.BlockSpec((sgrp, ghd), lambda i, j: (j, 0)),          # K packed (src tile)
            pl.BlockSpec((sgrp, ghd), lambda i, j: (j, 0)),          # V packed (src tile)
            pl.BlockSpec((tdst, sgrp, gin), lambda i, j: (i, j, 0)), # raw edge feats
            pl.BlockSpec((gin, ghd), lambda i, j: (0, 0)),           # block-diag We
            pl.BlockSpec((1, ghd), lambda i, j: (0, 0)),             # tiled be
            pl.BlockSpec((ghd, gh), lambda i, j: (0, 0)),            # head-sum selector
            pl.BlockSpec((gh, ghd), lambda i, j: (0, 0)),            # head-broadcast sel
            pl.BlockSpec((ghd, hd), lambda i, j: (0, 0)),            # group-reduce sel
        ],
        out_specs=(
            pl.BlockSpec((tdst, hd), lambda i, j: (i, 0)),
            pl.BlockSpec((tdst, sgrp, ghd), lambda i, j: (i, j, 0)),
        ),
        scratch_shapes=[
            pltpu.VMEM((tdst, ghd), jnp.float32),   # wV accumulator
            pltpu.VMEM((tdst, ghd), jnp.float32),   # z  accumulator
        ],
        compiler_params=pltpu.CompilerParams(
            dimension_semantics=("parallel", "arbitrary"),
            vmem_limit_bytes=vmem_limit),
    )(q_t, k_p, v_p, e3, we_blk, be_blk, sel_log, sel_bc, sel_grp)


# ----------------------------------------------------------------------------
# Module wrapper (parameters + free layout reshapes / tiny packing ops only)
# ----------------------------------------------------------------------------
class MultiHeadAttentionLayerPallas:
    def __init__(self, in_dim, out_dim, num_heads, key):
        self.in_dim = in_dim
        self.out_dim = out_dim
        self.num_heads = num_heads
        hd = out_dim * num_heads

        def xavier_normal(k, fan_in, fan_out, gain):
            std = gain * math.sqrt(2.0 / (fan_in + fan_out))
            return std * jax.random.normal(k, (fan_in, fan_out), jnp.float32)

        ks = jax.random.split(key, 8)
        gain = math.sqrt(2.0)  # calculate_gain('relu')
        self.Wq = xavier_normal(ks[0], in_dim, hd, gain)
        self.Wk = xavier_normal(ks[1], in_dim, hd, gain)
        self.Wv = xavier_normal(ks[2], in_dim, hd, gain)
        self.We = xavier_normal(ks[3], in_dim, hd, 1.0)
        bscale = 1.0 / math.sqrt(in_dim)
        self.bq = bscale * jax.random.uniform(ks[4], (1, hd), jnp.float32, -1.0, 1.0)
        self.bk = bscale * jax.random.uniform(ks[5], (1, hd), jnp.float32, -1.0, 1.0)
        self.bv = bscale * jax.random.uniform(ks[6], (1, hd), jnp.float32, -1.0, 1.0)
        self.be = bscale * jax.random.uniform(ks[7], (1, hd), jnp.float32, -1.0, 1.0)

        # Fused Q|K|V projection with 1/sqrt(D) folded into the Q weights/bias
        # (removes the per-edge in-kernel scale multiply).
        inv_scale = 1.0 / math.sqrt(out_dim)
        self.Wqkv = jnp.concatenate([self.Wq * inv_scale, self.Wk, self.Wv], axis=1)
        self.bqkv = jnp.concatenate([self.bq * inv_scale, self.bk, self.bv], axis=1)

    def __call__(self, h, e, *, tdst=None, tsrc=None):
        """h: (N, in_dim); e: (N*N, in_dim) flat edge feats (edge u->v at v*N+u)."""
        n = h.shape[0]
        hd = self.num_heads * self.out_dim

        qkv = linear(h, self.Wqkv, self.bqkv)                  # (N, 3*H*D)
        q, k, v = qkv[:, :hd], qkv[:, hd:2 * hd], qkv[:, 2 * hd:]

        # lane-packing factor: G consecutive sources share one 128-lane row
        g = math.gcd(128 // hd, n) if (hd < 128 and 128 % hd == 0) else 1
        ghd, gin = g * hd, g * self.in_dim

        q_t = jnp.tile(q, (1, g))                              # (N, G*HD), tiny
        k_p = k.reshape(n // g, ghd)                           # free reshape
        v_p = v.reshape(n // g, ghd)                           # free reshape
        e3 = e.reshape(n, n // g, gin)                         # free reshape

        we_blk = jnp.kron(jnp.eye(g, dtype=jnp.float32), self.We)   # (G*in, G*HD)
        be_blk = jnp.tile(self.be, (1, g))                           # (1, G*HD)
        sel_log, sel_bc, sel_grp = _selectors(g, self.num_heads, self.out_dim)

        h2, e_out3 = fused_edge_attention(
            q_t, k_p, v_p, e3, we_blk, be_blk, sel_log, sel_bc, sel_grp,
            in_dim=self.in_dim, hd=hd, num_heads=self.num_heads,
            tdst=tdst, tsrc=tsrc)

        # free metadata reshapes (packed layout is bit-identical to edge-major)
        h_out = h2.reshape(n, self.num_heads, self.out_dim)
        e_out = e_out3.reshape(n * n, self.num_heads, self.out_dim)
        return h_out, e_out


# ----------------------------------------------------------------------------
# Plain-JAX reference (same semantics) for correctness check
# ----------------------------------------------------------------------------
def reference(layer, h, e):
    N = h.shape[0]
    H, D = layer.num_heads, layer.out_dim
    Q_h = (h @ layer.Wq + layer.bq).reshape(N, H, D)
    K_h = (h @ layer.Wk + layer.bk).reshape(N, H, D)
    V_h = (h @ layer.Wv + layer.bv).reshape(N, H, D)
    pe = (e @ layer.We + layer.be).reshape(N, N, H, D)        # (dst, src, H, D)

    score = K_h[None, :, :, :] * Q_h[:, None, :, :] / math.sqrt(D) * pe
    e_out = score.reshape(N * N, H, D)
    a = jnp.exp(jnp.clip(jnp.sum(score, axis=-1), -5.0, 5.0))  # (dst, src, H)
    wV = jnp.einsum('vsh,shd->vhd', a, V_h)
    z = jnp.sum(a, axis=1)[:, :, None]
    h_out = wV / (z + 1e-6)
    return h_out, e_out


if __name__ == "__main__":
    in_dim, out_dim, num_heads = 32, 8, 4
    N = 16                    # nodes
    E = N * N                 # fully-connected directed graph

    key = jax.random.PRNGKey(0)
    k_param, k_h, k_e = jax.random.split(key, 3)

    layer = MultiHeadAttentionLayerPallas(in_dim, out_dim, num_heads, k_param)
    h = jax.random.normal(k_h, (N, in_dim), jnp.float32)
    e = jax.random.normal(k_e, (E, in_dim), jnp.float32)

    # tdst=8 -> 2 destination tiles (pipelined / megacore-shardable grid path)
    h_out, e_out = layer(h, e, tdst=8)
    jax.block_until_ready((h_out, e_out))

    h_ref, e_ref = reference(layer, h, e)
    np.testing.assert_allclose(np.asarray(h_out), np.asarray(h_ref), rtol=1e-3, atol=1e-3)
    np.testing.assert_allclose(np.asarray(e_out), np.asarray(e_ref), rtol=1e-3, atol=1e-3)

    assert h_out.shape == (N, num_heads, out_dim)
    assert e_out.shape == (E, num_heads, out_dim)
    print("KERNEL_OK")
</pallas_src>

<mosaic_0001>
module attributes {stable_mosaic.version = 11 : i64} {
  func.func @_linear_kernel(%arg0: i32, %arg1: memref<16x32xf32, #tpu.memory_space<vmem>>, %arg2: memref<32x96xf32, #tpu.memory_space<vmem>>, %arg3: memref<1x96xf32, #tpu.memory_space<vmem>>, %arg4: memref<16x96xf32, #tpu.memory_space<vmem>>) attributes {dimension_semantics = [#tpu.dimension_semantics<parallel>], iteration_bounds = array<i64: 1>, scalar_prefetch = 0 : i64, scratch_operands = 0 : i64, tpu.core_type = #tpu.core_type<tc>, window_params = [{transform_indices = @transform_0, window_bounds = array<i64: 16, 32>}, {pipeline_mode = #tpu.pipeline_mode<synchronous>, transform_indices = @transform_1, window_bounds = array<i64: 32, 96>}, {pipeline_mode = #tpu.pipeline_mode<synchronous>, transform_indices = @transform_2, window_bounds = array<i64: 1, 96>}, {transform_indices = @transform_3, window_bounds = array<i64: 16, 96>}]} {
    %c0 = arith.constant 0 : index
    %c0_0 = arith.constant 0 : index
    %0 = vector.load %arg1[%c0, %c0_0] : memref<16x32xf32, #tpu.memory_space<vmem>>, vector<16x32xf32>
    %c0_1 = arith.constant 0 : index
    %c0_2 = arith.constant 0 : index
    %1 = vector.load %arg2[%c0_1, %c0_2] : memref<32x96xf32, #tpu.memory_space<vmem>>, vector<32x96xf32>
    %cst = arith.constant dense<0.000000e+00> : vector<16x96xf32>
    %2 = tpu.matmul %0, %1, %cst {dimension_numbers = #tpu.dot_dimension_numbers<[1], [0], [0], [1], [0, 0, 1, 1], [], []>} : vector<16x32xf32>, vector<32x96xf32>, vector<16x96xf32> -> vector<16x96xf32>
    %c0_3 = arith.constant 0 : index
    %c0_4 = arith.constant 0 : index
    %3 = vector.load %arg3[%c0_3, %c0_4] : memref<1x96xf32, #tpu.memory_space<vmem>>, vector<1x96xf32>
    %4 = vector.broadcast %3 : vector<1x96xf32> to vector<16x96xf32>
    %5 = arith.addf %2, %4 : vector<16x96xf32>
    %c0_5 = arith.constant 0 : index
    %c0_6 = arith.constant 0 : index
    %6 = vector.load %arg4[%c0_5, %c0_6] : memref<16x96xf32, #tpu.memory_space<vmem>>, vector<16x96xf32>
    tpu.vector_store %arg4[%c0_5, %c0_6], %5 {strides = array<i32>} : memref<16x96xf32, #tpu.memory_space<vmem>>, vector<16x96xf32>,
    return
  }
  func.func @transform_0(%arg0: i32) -> (i32, i32) {
    %c0_i32 = arith.constant 0 : i32
    %c0_i32_0 = arith.constant 0 : i32
    return %arg0, %c0_i32 : i32, i32
  }
  func.func @transform_1(%arg0: i32) -> (i32, i32) {
    %c0_i32 = arith.constant 0 : i32
    %c0_i32_0 = arith.constant 0 : i32
    %c0_i32_1 = arith.constant 0 : i32
    return %c0_i32, %c0_i32_0 : i32, i32
  }
  func.func @transform_2(%arg0: i32) -> (i32, i32) {
    %c0_i32 = arith.constant 0 : i32
    %c0_i32_0 = arith.constant 0 : i32
    %c0_i32_1 = arith.constant 0 : i32
    return %c0_i32, %c0_i32_0 : i32, i32
  }
  func.func @transform_3(%arg0: i32) -> (i32, i32) {
    %c0_i32 = arith.constant 0 : i32
    %c0_i32_0 = arith.constant 0 : i32
    return %arg0, %c0_i32 : i32, i32
  }
}

</mosaic_0001>

<bundles_post_ra>
// kernel: tpu_custom_call.1
= control target key start
LH: loop header
LB: loop body
LE: loop exit
PB: predicated region body
PF: predicated region fallthrough
CT: control target
= control target key end

     0   :  { %8 = vsyncpa [#allocation3], 0  ;;  %s337_s0 = inlined_call_operand.hbm [shape: f32[16,32], index: 0, kind: input, shape index: {}]   ;;  %s338_s1 = inlined_call_operand.hbm [shape: f32[32,96], index: 1, kind: input, shape index: {}]   ;;  %s339_s2 = inlined_call_operand.vmem [shape: f32[1,96], index: 2, kind: input, shape index: {}]   ;;  %s340_s3 = inlined_call_operand.hbm [shape: f32[16,96], index: 3, kind: output, shape index: {}]  }
   0x1   :  { %9 = vsyncpa [#allocation6], 0 }
   0x2   :  { %10 = vsyncpa [#allocation4], 0  ;;  %s264_s12 = smov [#allocation2]   ;;  %s192_s16 = scalar_lea.hbm %s337_s0, 256 }
   0x3   :  { %s16_s13 = sshll.u32 %s264_s12, 4  ;;  %p193_p0 = scmp.ne.s32.totalorder %s337_s0, %s192_s16  ;;  %s17_s13 = int_to_ptr.vmem [resolvable:$true] %s16_s13 }
   0x4   :  { %p196_p1 = scmp.lt.u32.totalorder %s192_s16, %s337_s0 }
   0x6   :  { %p198_p2 = pnand %p196_p1, %p193_p0 }
   0x8   :  { %201 = shalt.err (!%p198_p2)
}
   0x9   :  { %s202_s21 = scalar_lea.vmem %s17_s13, 256  ;;  %p207_p4 = scmp.lt.s32.totalorder %s17_s13, %s17_s13 }
   0xa   :  { %p203_p3 = scmp.ne.s32.totalorder %s17_s13, %s202_s21  ;;  %p208_p5 = scmp.lt.s32.totalorder %s202_s21, %s202_s21 }
   0xc   :  { %p209_p6 = por %p208_p5, %p207_p4 }
   0xe   :  { %p210_p7 = pnand %p209_p6, %p203_p3 }
  0x10   :  { %213 = shalt.err (!%p210_p7)
}
  0x11   :  { %s265_s22 = smov 128   ;;  %s266_s23 = smov 8  }
  0x12   :  { %22 = dma.hbm_to_vmem [thread:$0]  %s337_s0, 256, %s17_s13, [#allocation3], %s265_s22, %s265_s22, %s266_s23  }
  0x13   :  { %s267_s26 = smov [#allocation5]   ;;  %s214_s30 = scalar_lea.hbm %s338_s1, 512 }
  0x14   :  { %s28_s27 = sshll.u32 %s267_s26, 4  ;;  %p215_p8 = scmp.ne.s32.totalorder %s338_s1, %s214_s30  ;;  %s29_s27 = int_to_ptr.vmem [resolvable:$true] %s28_s27 }
  0x15   :  { %p218_p9 = scmp.lt.u32.totalorder %s214_s30, %s338_s1 }
  0x17   :  { %p220_p10 = pnand %p218_p9, %p215_p8 }
  0x19   :  { %223 = shalt.err (!%p220_p10)
}
  0x1a   :  { %s224_s8 = scalar_lea.vmem %s29_s27, 512  ;;  %p229_p12 = scmp.lt.s32.totalorder %s29_s27, %s29_s27 }
  0x1b   :  { %p225_p11 = scmp.ne.s32.totalorder %s29_s27, %s224_s8  ;;  %p230_p13 = scmp.lt.s32.totalorder %s224_s8, %s224_s8 }
  0x1d   :  { %p231_p0 = por %p230_p13, %p229_p12 }
  0x1f   :  { %p232_p1 = pnand %p231_p0, %p225_p11 }
  0x21   :  { %235 = shalt.err (!%p232_p1)
}
  0x22   :  { %34 = dma.hbm_to_vmem [thread:$0]  %s338_s1, 512, %s29_s27, [#allocation6], %s265_s22, %s265_s22, %s266_s23  }
  0x23   :  { %258 = dma.done.wait [#allocation3], 256  }
  0x24   :  { %259 = vsyncadd [#allocation3], 4294967040 }
  0x25   :  { %260 = dma.done.wait [#allocation6], 512  }
  0x26   :  { %261 = vsyncadd [#allocation6], 4294966784  ;;  %vm56_vm0 = vcmask 261120   ;;  %v45_v0 = vld [vmem:[#allocation5] sm:$0xff]  ;;  %v46_v1 = vld [vmem:[#allocation5 + $0x8] sm:$0xff]  ;;  %s268_s11 = smov [#allocation7]  }
  0x27   :  { %v47_v2 = vld [vmem:[#allocation5 + $0x10] sm:$0xff]  ;;  %v179_v3 = vpack.c.bf16 %v46_v1, %v45_v0  ;;  %v48_v4 = vld [vmem:[#allocation5 + $0x18] sm:$0xff]  ;;  %s146_s12 = sshll.u32 %s268_s11, 4  ;;  %vm138_vm1 = vcmask 785408   ;;  %s147_s12 = int_to_ptr.vmem [resolvable:$true] %s146_s12 }
  0x28   :  { %v43_v5 = vld [vmem:[#allocation2] sm:$0xff]  ;;  %v183_v6 = vpack.c.bf16 %v48_v4, %v47_v2  ;;  %v44_v7 = vld [vmem:[#allocation2 + $0x8] sm:$0xff]  ;;  %s236_s13 = scalar_lea.vmem %s147_s12, 256  ;;  %p241_p3 = scmp.lt.s32.totalorder %s147_s12, %s147_s12 }
  0x29   :  { %176 = vmatprep.mubr.msk.f32.mxu0 %vm56_vm0, %v43_v5  ;;  %180 = vmatprep.subr.bf16.mxu0 %v179_v3  ;;  %v159_v8 = vld [vmem:[%s339_s2] ss:$0 sm:$0xff]  ;;  %p237_p2 = scmp.ne.s32.totalorder %s147_s12, %s236_s13  ;;  %p242_p4 = scmp.lt.s32.totalorder %s236_s13, %s236_s13 }
  0x2a   :  { %182 = vmatpush3.bf16.msra.mxu0 %v179_v3 }
  0x2b   :  { %184 = vmatprep.subr.bf16.mxu0 %v183_v6  ;;  %p243_p5 = por %p242_p4, %p241_p3 }
  0x2d   :  { %p244_p6 = pnand %p243_p5, %p237_p2 }
  0x2e   :  { %186 = vmatpush3.bf16.msra.mxu0 %v183_v6 }
  0x31   :  { %177 = vmatmul.mubr.msk.f32.vlgmr.msra.gmra.mrb[0].mxu0 %vm56_vm0, %v44_v7 }
 0x104   :  { %v178_v9 = vpop.f32.mrb[0].mxu0 }
 0x105   :  { %v135_v10 = vadd.f32 %v178_v9, %v159_v8  ;;  %v129_v11 = vpop.f32.mrb[1].mxu0 }
 0x106   :  { %v130_v12 = vadd.f32 %v159_v8, %v129_v11 }
 0x107   :  { %140 = vst.msk [vmem:[#allocation7 + $0x8] sm:$0xff] %vm138_vm1, %v135_v10 }
 0x108   :  { %139 = vst.msk [vmem:[#allocation7] sm:$0xff] %vm138_vm1, %v130_v12 }
 0x109   :  { %247 = shalt.err (!%p244_p6)
}
 0x10a   :  { %s248_s2 = scalar_lea.hbm %s340_s3, 256 }
 0x10b   :  { %p249_p7 = scmp.ne.s32.totalorder %s340_s3, %s248_s2  ;;  %p252_p8 = scmp.lt.u32.totalorder %s248_s2, %s340_s3 }
 0x10d   :  { %p254_p9 = pnand %p252_p8, %p249_p7 }
 0x10f   :  { %257 = shalt.err (!%p254_p9)
}
 0x110   :  { %152 = dma.vmem_to_hbm [thread:$0]  %s147_s12, 256, %s340_s3, [#allocation4], %s265_s22, %s265_s22, %s266_s23  }
 0x111   :  { %262 = dma.done.wait [#allocation4], 256  }
 0x112   :  { %263 = vsyncadd [#allocation4], 4294967040 }
 0x113   :  { %156 = vsyncpa [#allocation3], 1 }
 0x114   :  { %157 = vsyncpa [#allocation6], 1 }
 0x115   :  { %158 = vsyncpa [#allocation4], 1 }

</bundles_post_ra>
